<compile_context>
chip_gen: v7x
topology: tpu7x:2x2x1
jax: 0.10.0
libtpu: 0.0.40
codegen_flags: <defaults>
</compile_context>

<pallas_src>
import jax
import jax.numpy as jnp
from jax.experimental import pallas as pl
from jax.experimental.pallas import tpu as pltpu


# ---------------------------------------------------------------------------
# Per-generation tuning (trace-time constants, derived once at import).
# ---------------------------------------------------------------------------
def _device_tuning():
    """Return (per-operand tile bytes target, vmem_limit_bytes, bf16_compute_ok)."""
    try:
        kind = jax.devices()[0].device_kind.lower()
    except Exception:
        kind = ""
    if "v7" in kind:
        # 3.2 TB/s HBM, 64 MiB VMEM/TC but only 32 MiB default scoped limit:
        # 3 operands x 2 pipeline buffers x 6 MiB = 36 MiB -> explicit limit.
        return 6 << 20, 56 << 20, True
    if "v6" in kind:
        # 1.4 TB/s HBM, 128 MiB VMEM: 6 x 4 MiB = 24 MiB.
        return 4 << 20, 48 << 20, True
    if "v5" in kind:
        # 16 MiB default scoped VMEM, no bf16 VALU -> conservative tiles.
        return 2 << 20, 32 << 20, False
    return 2 << 20, 32 << 20, False


_TILE_BYTES_TARGET, _VMEM_LIMIT_BYTES, _BF16_COMPUTE_OK = _device_tuning()

_LANE_CANDIDATES = (4096, 2048, 1024, 512, 256, 128)


def _make_kernel(compute_dtype):
    def _kernel(alpha_ref, x0_ref, x1_ref, o_ref):
        # alpha_ref: (1,) f32 scalar in SMEM; x0/x1/o: (TM, L) VMEM tiles.
        a = alpha_ref[0].astype(compute_dtype)
        x0 = x0_ref[...].astype(compute_dtype)
        x1 = x1_ref[...].astype(compute_dtype)
        # x0 + a*(x1 - x0)  ==  x0*(1-a) + x1*a, one fewer vector multiply.
        o_ref[...] = (x0 + a * (x1 - x0)).astype(o_ref.dtype)

    return _kernel


def _choose_row_tile(rows, lane, itemsize, sublane):
    """Pick the row-tile size: ~per-generation bytes/operand, sublane-aligned."""
    target = max(sublane, _TILE_BYTES_TARGET // (lane * itemsize))
    if rows <= target:
        return rows                      # block == full dim -> always legal
    return max(sublane, (target // sublane) * sublane)


def _blend_bulk(x0_2d, x1_2d, alpha_arr, tm, compute_dtype):
    rows, lane = x0_2d.shape
    itemsize = jnp.dtype(x0_2d.dtype).itemsize
    n_bulk = rows * lane
    grid = (pl.cdiv(rows, tm),)
    return pl.pallas_call(
        _make_kernel(compute_dtype),
        out_shape=jax.ShapeDtypeStruct((rows, lane), x0_2d.dtype),
        grid=grid,
        in_specs=[
            pl.BlockSpec(memory_space=pltpu.MemorySpace.SMEM),   # alpha scalar
            pl.BlockSpec((tm, lane), lambda i: (i, 0)),
            pl.BlockSpec((tm, lane), lambda i: (i, 0)),
        ],
        out_specs=pl.BlockSpec((tm, lane), lambda i: (i, 0)),
        compiler_params=pltpu.CompilerParams(
            dimension_semantics=("parallel",),
            vmem_limit_bytes=_VMEM_LIMIT_BYTES,
        ),
        cost_estimate=pl.CostEstimate(
            flops=3 * n_bulk,
            transcendentals=0,
            bytes_accessed=3 * n_bulk * itemsize,
        ),
    )(alpha_arr, x0_2d, x1_2d)


@jax.jit
def _fadein_impl(x0, x1, alpha):
    """out = x0 * (1 - alpha) + x1 * alpha, elementwise. alpha is a traced f32."""
    orig_shape = x0.shape
    dtype = x0.dtype
    n_elems = x0.size
    itemsize = jnp.dtype(dtype).itemsize
    sublane = max(8, 32 // itemsize)     # 8 f32 / 16 bf16 / 32 int8|fp8

    compute_dtype = (
        dtype if (dtype == jnp.bfloat16 and _BF16_COMPUTE_OK) else jnp.float32
    )
    alpha_f32 = jnp.asarray(alpha, dtype=jnp.float32).reshape(1)

    # Lane width: largest multiple of 128 that divides n_elems (no tail);
    # otherwise lane = 128 and the (<128)-element tail is handled in jnp.
    lane = 128
    for cand in _LANE_CANDIDATES:
        if n_elems % cand == 0:
            lane = cand
            break
    tail = n_elems % lane
    n_bulk = n_elems - tail

    x0_flat = x0.reshape(-1)
    x1_flat = x1.reshape(-1)

    def _jnp_blend(a_flat, b_flat):
        a = alpha_f32[0].astype(compute_dtype)
        t0 = a_flat.astype(compute_dtype)
        t1 = b_flat.astype(compute_dtype)
        return (t0 + a * (t1 - t0)).astype(dtype)

    if n_bulk == 0:
        # Tiny input (< 128 elems): not worth a kernel launch.
        return _jnp_blend(x0_flat, x1_flat).reshape(orig_shape)

    rows = n_bulk // lane
    tm = _choose_row_tile(rows, lane, itemsize, sublane)

    x0_2d = x0_flat[:n_bulk].reshape(rows, lane)
    x1_2d = x1_flat[:n_bulk].reshape(rows, lane)
    out_flat = _blend_bulk(x0_2d, x1_2d, alpha_f32, tm, compute_dtype).reshape(-1)

    if tail:
        # O(lane) tail blended outside the kernel; no full-array pad/slice passes.
        tail_out = _jnp_blend(x0_flat[n_bulk:], x1_flat[n_bulk:])
        out_flat = jnp.concatenate([out_flat, tail_out])

    return out_flat.reshape(orig_shape)


def fadein(x0, x1, alpha):
    """Elementwise fade-in blend: x0 * (1 - alpha) + x1 * alpha."""
    assert x0.shape == x1.shape and x0.dtype == x1.dtype
    return _fadein_impl(x0, x1, jnp.float32(alpha))


class FadeinLayer:
    """JAX port of fadein_layer: holds alpha in [0, 1]; forward blends x[0], x[1]."""

    def __init__(self):
        self.alpha = 0.0

    def update_alpha(self, value):
        self.alpha = max(0.0, min(float(value), 1.0))

    def __call__(self, x):
        # alpha is a Python float -> trace-time branch; endpoints skip the
        # kernel (and its full 3N-byte HBM pass) entirely.
        if self.alpha == 0.0:
            return x[0]
        if self.alpha == 1.0:
            return x[1]
        return fadein(x[0], x[1], self.alpha)


if __name__ == "__main__":
    key = jax.random.PRNGKey(0)
    k0, k1 = jax.random.split(key)
    # Small NCHW shapes consistent with a progressive-GAN fade-in input pair.
    x0 = jax.random.normal(k0, (2, 4, 16, 16), dtype=jnp.float32)
    x1 = jax.random.normal(k1, (2, 4, 16, 16), dtype=jnp.float32)

    layer = FadeinLayer()
    layer.update_alpha(0.3)

    out = jax.block_until_ready(layer((x0, x1)))
    ref = x0 * (1.0 - 0.3) + x1 * 0.3
    assert out.shape == x0.shape
    assert jnp.allclose(out, ref, atol=1e-6), "mismatch vs reference"

    # Short-circuit endpoints (no kernel launch).
    layer.update_alpha(0.0)
    assert jnp.array_equal(layer((x0, x1)), x0)
    layer.update_alpha(1.0)
    assert jnp.array_equal(layer((x0, x1)), x1)

    # Larger, multi-tile path (grid > 1 on smaller tile targets) to validate tiling.
    k2, k3 = jax.random.split(k1)
    y0 = jax.random.normal(k2, (4, 64, 64, 64), dtype=jnp.float32)
    y1 = jax.random.normal(k3, (4, 64, 64, 64), dtype=jnp.float32)
    out2 = jax.block_until_ready(fadein(y0, y1, 0.7))
    ref2 = y0 * (1.0 - 0.7) + y1 * 0.7
    assert jnp.allclose(out2, ref2, atol=1e-5), "mismatch vs reference (large)"

    print("KERNEL_OK")
</pallas_src>

<mosaic_0001>
module attributes {stable_mosaic.version = 11 : i64} {
  func.func @_kernel(%arg0: i32, %arg1: memref<1xf32, #tpu.memory_space<smem>>, %arg2: memref<1x2048xf32, #tpu.memory_space<vmem>>, %arg3: memref<1x2048xf32, #tpu.memory_space<vmem>>, %arg4: memref<1x2048xf32, #tpu.memory_space<vmem>>) attributes {dimension_semantics = [#tpu.dimension_semantics<parallel>], iteration_bounds = array<i64: 1>, scalar_prefetch = 0 : i64, scratch_operands = 0 : i64, tpu.core_type = #tpu.core_type<tc>, window_params = [{transform_indices = @transform_0, window_bounds = array<i64: 1>}, {transform_indices = @transform_1, window_bounds = array<i64: 1, 2048>}, {transform_indices = @transform_2, window_bounds = array<i64: 1, 2048>}, {transform_indices = @transform_3, window_bounds = array<i64: 1, 2048>}]} {
    %c0 = arith.constant 0 : index
    %0 = memref.load %arg1[%c0] : memref<1xf32, #tpu.memory_space<smem>>
    %c0_0 = arith.constant 0 : index
    %c0_1 = arith.constant 0 : index
    %1 = vector.load %arg2[%c0_0, %c0_1] : memref<1x2048xf32, #tpu.memory_space<vmem>>, vector<1x2048xf32>
    %c0_2 = arith.constant 0 : index
    %c0_3 = arith.constant 0 : index
    %2 = vector.load %arg3[%c0_2, %c0_3] : memref<1x2048xf32, #tpu.memory_space<vmem>>, vector<1x2048xf32>
    %3 = arith.subf %2, %1 : vector<1x2048xf32>
    %4 = vector.broadcast %0 : f32 to vector<1x2048xf32>
    %5 = arith.mulf %4, %3 : vector<1x2048xf32>
    %6 = arith.addf %1, %5 : vector<1x2048xf32>
    %c0_4 = arith.constant 0 : index
    %c0_5 = arith.constant 0 : index
    %7 = vector.load %arg4[%c0_4, %c0_5] : memref<1x2048xf32, #tpu.memory_space<vmem>>, vector<1x2048xf32>
    tpu.vector_store %arg4[%c0_4, %c0_5], %6 {strides = array<i32>} : memref<1x2048xf32, #tpu.memory_space<vmem>>, vector<1x2048xf32>,
    return
  }
  func.func @transform_0(%arg0: i32) -> i32 {
    %c0_i32 = arith.constant 0 : i32
    %c0_i32_0 = arith.constant 0 : i32
    return %c0_i32 : i32
  }
  func.func @transform_1(%arg0: i32) -> (i32, i32) {
    %c0_i32 = arith.constant 0 : i32
    %c0_i32_0 = arith.constant 0 : i32
    return %arg0, %c0_i32 : i32, i32
  }
  func.func @transform_2(%arg0: i32) -> (i32, i32) {
    %c0_i32 = arith.constant 0 : i32
    %c0_i32_0 = arith.constant 0 : i32
    return %arg0, %c0_i32 : i32, i32
  }
  func.func @transform_3(%arg0: i32) -> (i32, i32) {
    %c0_i32 = arith.constant 0 : i32
    %c0_i32_0 = arith.constant 0 : i32
    return %arg0, %c0_i32 : i32, i32
  }
}

</mosaic_0001>

<bundles_post_ra>
// kernel: _fadein_impl.1
= control target key start
LH: loop header
LB: loop body
LE: loop exit
PB: predicated region body
PF: predicated region fallthrough
CT: control target
= control target key end

     0   :  { %s74_s0 = inlined_call_operand.<no memory space> [shape: f32[1], index: 0, kind: input, shape index: {}]   ;;  %s75_s1 = inlined_call_operand.vmem [shape: f32[1,2048], index: 1, kind: input, shape index: {}]   ;;  %s76_s2 = inlined_call_operand.vmem [shape: f32[1,2048], index: 2, kind: input, shape index: {}]   ;;  %s77_s3 = inlined_call_operand.vmem [shape: f32[1,2048], index: 3, kind: output, shape index: {}]  }
   0x1   :  { %v16_v0 = vld [vmem:[%s75_s1] sm:$0xff]  ;;  %v22_v2 = vstv %s74_s0  ;;  %v17_v3 = vld [vmem:[%s75_s1 + $0x8] sm:$0xff] }
   0x2   :  { %v18_v1 = vld [vmem:[%s76_s2] sm:$0xff]  ;;  %v19_v5 = vld [vmem:[%s76_s2 + $0x8] sm:$0xff] }
   0x3   :  { %v20_v4 = vsub.f32 %v18_v1, %v16_v0  ;;  %v21_v6 = vsub.f32 %v19_v5, %v17_v3 }
   0x5   :  { %v23_v7 = vmul.f32 %v22_v2, %v20_v4  ;;  %v24_v8 = vmul.f32 %v22_v2, %v21_v6 }
   0x7   :  { %v25_v9 = vadd.f32 %v23_v7, %v16_v0  ;;  %v26_v10 = vadd.f32 %v24_v8, %v17_v3 }
   0x9   :  { %27 = vst [vmem:[%s77_s3] sm:$0xff] %v25_v9  ;;  %28 = vst [vmem:[%s77_s3 + $0x8] sm:$0xff] %v26_v10 }

</bundles_post_ra>
